<compile_context>
chip_gen: v7x
topology: tpu7x:2x2x1
jax: 0.10.0
libtpu: 0.0.40
codegen_flags: <defaults>
</compile_context>

<pallas_src>
import functools
import math

import jax
import jax.numpy as jnp
import numpy as np
from jax.experimental import pallas as pl
from jax.experimental.pallas import tpu as pltpu


# ----------------------------------------------------------------------------
# Trace-time constant builders (align_corners=True bilinear interpolation)
# ----------------------------------------------------------------------------

def _interp_matrix_np(out_size: int, in_size: int) -> np.ndarray:
    """Dense (out_size, in_size) 1-D bilinear interp matrix, align_corners=True.

    Matches torch.nn.Upsample(mode='bilinear', align_corners=True) along one axis.
    """
    i = np.arange(out_size, dtype=np.float64)
    if out_size == 1:
        src = np.zeros_like(i)
    else:
        src = i * (in_size - 1) / (out_size - 1)
    lo = np.clip(np.floor(src).astype(np.int64), 0, in_size - 1)
    hi = np.minimum(lo + 1, in_size - 1)
    frac = src - lo
    m = np.zeros((out_size, in_size), dtype=np.float64)
    m[np.arange(out_size), lo] += 1.0 - frac
    m[np.arange(out_size), hi] += frac
    return m.astype(np.float32)


def _zero_padded(m: np.ndarray) -> np.ndarray:
    """Prepend/append one all-zero row (== the conv's zero padding of the upsampled map)."""
    z = np.zeros((1, m.shape[1]), dtype=m.dtype)
    return np.concatenate([z, m, z], axis=0)


def _choose_row_tile(ho: int) -> int:
    """8-aligned output-row tile; prefer >=2 tiles so the parallel grid can split cores."""
    for tr in (128, 64, 32, 16, 8):
        if ho % tr == 0 and ho // tr >= 2:
            return tr
    return ho


# ----------------------------------------------------------------------------
# The fused Pallas kernel: upsample + 3x3 conv + bias, one store per tile
# ----------------------------------------------------------------------------

def _fused_upsample_conv_kernel(x_ref, mh_ref, g_ref, bias_ref, o_ref, *, tr):
    # x_ref   : (1, H, W*Cin)        input rows, channels minor (lane axis)
    # mh_ref  : (1, 3*tr, H)         H-interp rows for this tile, one row-block per dy tap
    # g_ref   : (3, W*Cin, Wo*Cout)  folded (W-interp x horizontal taps x conv weights)
    # bias_ref: (1, Wo*Cout)
    # o_ref   : (1, tr, Wo*Cout)
    x2d = x_ref[0]                                                      # (H, W*Cin)

    # Bilinear upsample along H for all three vertical conv taps in one MXU matmul.
    u = jnp.dot(mh_ref[0], x2d, preferred_element_type=jnp.float32)     # (3*tr, W*Cin)

    # 3x3 conv: vertical taps = the three tr-row slices of u; the W-upsample and the
    # three horizontal taps are pre-folded into G[dy].  Accumulate in f32, fuse the
    # bias add into the single (lane-dense) store.
    acc = jnp.dot(u[0 * tr:1 * tr], g_ref[0], preferred_element_type=jnp.float32)
    acc = acc + jnp.dot(u[1 * tr:2 * tr], g_ref[1], preferred_element_type=jnp.float32)
    acc = acc + jnp.dot(u[2 * tr:3 * tr], g_ref[2], preferred_element_type=jnp.float32)
    o_ref[0] = (acc + bias_ref[0]).astype(o_ref.dtype)


# ----------------------------------------------------------------------------
# UpsampleBlock forward (whole forward under a single jit, one pallas_call)
# ----------------------------------------------------------------------------

@functools.partial(jax.jit, static_argnames=("scale_factor",))
def upsample_block_forward(params, x_nchw, scale_factor=2):
    n, cin, h, w = x_nchw.shape
    ho, wo = h * scale_factor, w * scale_factor
    wgt = params["conv"]["w"].astype(jnp.float32)          # (3, 3, Cin, Cout)  HWIO
    bias = params["conv"]["b"].astype(jnp.float32)         # (Cout,)
    cout = wgt.shape[-1]

    tr = _choose_row_tile(ho)
    n_tiles = ho // tr

    # --- trace-time constants (depend only on static shapes) -------------------
    # H interpolation rows: output row r (conv tap dy) needs upsampled row r+dy-1;
    # the zero-padded matrix makes out-of-range rows exactly the conv's zero pad.
    mh_pad = _zero_padded(_interp_matrix_np(ho, h))        # (Ho+2, H)
    mh_stack = np.zeros((n_tiles, 3 * tr, h), np.float32)
    for t in range(n_tiles):
        for dy in range(3):
            mh_stack[t, dy * tr:(dy + 1) * tr, :] = mh_pad[t * tr + dy: t * tr + dy + tr, :]

    # W interpolation, shifted per horizontal conv tap (zero columns = conv zero pad).
    mw_pad = _zero_padded(_interp_matrix_np(wo, w))        # (Wo+2, W)
    mw_taps = np.stack([mw_pad[dx:dx + wo, :] for dx in range(3)], axis=0)  # (3, Wo, W)

    # --- fold W-interp + horizontal taps + conv weights into G[dy] -------------
    # G[dy][w*Cin+ci, wo*Cout+co] = sum_dx mw_taps[dx, wo, w] * wgt[dy, dx, ci, co]
    g = jnp.einsum("xuw,yxic->ywiuc", jnp.asarray(mw_taps), wgt)
    g = g.reshape(3, w * cin, wo * cout)
    bias_row = jnp.broadcast_to(bias, (wo, cout)).reshape(1, wo * cout)

    # --- lane-friendly input layout: (N, H, W*Cin), channels minor --------------
    x2d = jnp.transpose(x_nchw.astype(jnp.float32), (0, 2, 3, 1)).reshape(n, h, w * cin)

    out_flat = pl.pallas_call(
        functools.partial(_fused_upsample_conv_kernel, tr=tr),
        out_shape=jax.ShapeDtypeStruct((n, ho, wo * cout), jnp.float32),
        grid_spec=pltpu.PrefetchScalarGridSpec(
            num_scalar_prefetch=0,
            grid=(n, n_tiles),
            in_specs=[
                pl.BlockSpec((1, h, w * cin), lambda b, t: (b, 0, 0)),
                pl.BlockSpec((1, 3 * tr, h), lambda b, t: (t, 0, 0)),
                pl.BlockSpec((3, w * cin, wo * cout), lambda b, t: (0, 0, 0)),
                pl.BlockSpec((1, wo * cout), lambda b, t: (0, 0)),
            ],
            out_specs=pl.BlockSpec((1, tr, wo * cout), lambda b, t: (b, t, 0)),
        ),
        compiler_params=pltpu.CompilerParams(
            dimension_semantics=("parallel", "parallel"),
            # ~0.5 MiB resident per grid step; comfortably under v7x's 64 MiB VMEM.
            vmem_limit_bytes=32 * 1024 * 1024),
    )(x2d, jnp.asarray(mh_stack), g, bias_row)

    out = out_flat.reshape(n, ho, wo, cout)
    return jnp.transpose(out, (0, 3, 1, 2))                # NHWC -> NCHW


# ----------------------------------------------------------------------------
# Pure-JAX reference (independent of the kernel's folded-G formulation)
# ----------------------------------------------------------------------------

def _reference_forward(params, x_nchw, scale_factor):
    x = jnp.transpose(x_nchw.astype(jnp.float32), (0, 2, 3, 1))   # NHWC
    n, h, w, cin = x.shape
    ho, wo = h * scale_factor, w * scale_factor
    mh = jnp.asarray(_interp_matrix_np(ho, h))
    mw = jnp.asarray(_interp_matrix_np(wo, w))
    up = jnp.einsum("oh,nhwc->nowc", mh, x)
    up = jnp.einsum("pw,nowc->nopc", mw, up)                      # (N, Ho, Wo, Cin)
    y = jax.lax.conv_general_dilated(
        up, params["conv"]["w"].astype(jnp.float32),
        window_strides=(1, 1), padding=((1, 1), (1, 1)),
        dimension_numbers=("NHWC", "HWIO", "NHWC"))
    y = y + params["conv"]["b"].astype(jnp.float32)
    return jnp.transpose(y, (0, 3, 1, 2))


# ----------------------------------------------------------------------------
# Deterministic parameter init (mirrors nn.Conv2d's default init ranges)
# ----------------------------------------------------------------------------

def make_params(in_channels, out_channels, seed=0):
    kw_key, kb_key = jax.random.split(jax.random.PRNGKey(seed))
    fan_in = 3 * 3 * in_channels
    bound = 1.0 / math.sqrt(fan_in)
    w = jax.random.uniform(kw_key, (3, 3, in_channels, out_channels),
                           jnp.float32, -bound, bound)
    b = jax.random.uniform(kb_key, (out_channels,), jnp.float32, -bound, bound)
    return {"conv": {"w": w, "b": b}}


# ----------------------------------------------------------------------------
# Demo
# ----------------------------------------------------------------------------

if __name__ == "__main__":
    IN_CHANNELS = 4
    OUT_CHANNELS = 8
    SCALE = 2
    B, H, W = 2, 16, 16

    params = make_params(IN_CHANNELS, OUT_CHANNELS, seed=0)
    x = jax.random.normal(jax.random.PRNGKey(0), (B, IN_CHANNELS, H, W),
                          jnp.float32)                        # NCHW input

    y = upsample_block_forward(params, x, scale_factor=SCALE)
    y = jax.block_until_ready(y)

    assert y.shape == (B, OUT_CHANNELS, H * SCALE, W * SCALE)
    assert bool(jnp.all(jnp.isfinite(y)))

    y_ref = _reference_forward(params, x, SCALE)
    max_err = float(jnp.max(jnp.abs(y - y_ref)))
    assert bool(jnp.allclose(y, y_ref, rtol=5e-2, atol=5e-2)), max_err

    print("KERNEL_OK")
</pallas_src>

<mosaic_0001>
module attributes {stable_mosaic.version = 11 : i64} {
  func.func @_fused_upsample_conv_kernel(%arg0: i32, %arg1: i32, %arg2: memref<1x16x64xf32, #tpu.memory_space<vmem>>, %arg3: memref<1x48x16xf32, #tpu.memory_space<vmem>>, %arg4: memref<3x64x256xf32, #tpu.memory_space<vmem>>, %arg5: memref<1x256xf32, #tpu.memory_space<vmem>>, %arg6: memref<1x16x256xf32, #tpu.memory_space<vmem>>) attributes {dimension_semantics = [#tpu.dimension_semantics<parallel>, #tpu.dimension_semantics<parallel>], iteration_bounds = array<i64: 2, 2>, scalar_prefetch = 0 : i64, scratch_operands = 0 : i64, tpu.core_type = #tpu.core_type<tc>, window_params = [{transform_indices = @transform_0, window_bounds = array<i64: 1, 16, 64>}, {transform_indices = @transform_1, window_bounds = array<i64: 1, 48, 16>}, {pipeline_mode = #tpu.pipeline_mode<synchronous>, transform_indices = @transform_2, window_bounds = array<i64: 3, 64, 256>}, {pipeline_mode = #tpu.pipeline_mode<synchronous>, transform_indices = @transform_3, window_bounds = array<i64: 1, 256>}, {transform_indices = @transform_4, window_bounds = array<i64: 1, 16, 256>}]} {
    %c0 = arith.constant 0 : index
    %c0_0 = arith.constant 0 : index
    %c0_1 = arith.constant 0 : index
    %0 = vector.load %arg2[%c0, %c0_0, %c0_1] : memref<1x16x64xf32, #tpu.memory_space<vmem>>, vector<1x16x64xf32>
    %1 = vector.shape_cast %0 : vector<1x16x64xf32> to vector<16x64xf32>
    %c0_2 = arith.constant 0 : index
    %c0_3 = arith.constant 0 : index
    %c0_4 = arith.constant 0 : index
    %2 = vector.load %arg3[%c0_2, %c0_3, %c0_4] : memref<1x48x16xf32, #tpu.memory_space<vmem>>, vector<1x48x16xf32>
    %3 = vector.shape_cast %2 : vector<1x48x16xf32> to vector<48x16xf32>
    %cst = arith.constant dense<0.000000e+00> : vector<48x64xf32>
    %4 = tpu.matmul %3, %1, %cst {dimension_numbers = #tpu.dot_dimension_numbers<[1], [0], [0], [1], [0, 0, 1, 1], [], []>} : vector<48x16xf32>, vector<16x64xf32>, vector<48x64xf32> -> vector<48x64xf32>
    %5 = vector.extract_strided_slice %4 {offsets = [0, 0], sizes = [16, 64], strides = [1, 1]} : vector<48x64xf32> to vector<16x64xf32>
    %c0_5 = arith.constant 0 : index
    %c0_6 = arith.constant 0 : index
    %c0_7 = arith.constant 0 : index
    %6 = vector.load %arg4[%c0_5, %c0_6, %c0_7] : memref<3x64x256xf32, #tpu.memory_space<vmem>>, vector<1x64x256xf32>
    %7 = vector.shape_cast %6 : vector<1x64x256xf32> to vector<64x256xf32>
    %cst_8 = arith.constant dense<0.000000e+00> : vector<16x256xf32>
    %8 = tpu.matmul %5, %7, %cst_8 {dimension_numbers = #tpu.dot_dimension_numbers<[1], [0], [0], [1], [0, 0, 1, 1], [], []>} : vector<16x64xf32>, vector<64x256xf32>, vector<16x256xf32> -> vector<16x256xf32>
    %9 = vector.extract_strided_slice %4 {offsets = [16, 0], sizes = [16, 64], strides = [1, 1]} : vector<48x64xf32> to vector<16x64xf32>
    %c1 = arith.constant 1 : index
    %c0_9 = arith.constant 0 : index
    %c0_10 = arith.constant 0 : index
    %10 = vector.load %arg4[%c1, %c0_9, %c0_10] : memref<3x64x256xf32, #tpu.memory_space<vmem>>, vector<1x64x256xf32>
    %11 = vector.shape_cast %10 : vector<1x64x256xf32> to vector<64x256xf32>
    %cst_11 = arith.constant dense<0.000000e+00> : vector<16x256xf32>
    %12 = tpu.matmul %9, %11, %cst_11 {dimension_numbers = #tpu.dot_dimension_numbers<[1], [0], [0], [1], [0, 0, 1, 1], [], []>} : vector<16x64xf32>, vector<64x256xf32>, vector<16x256xf32> -> vector<16x256xf32>
    %13 = arith.addf %8, %12 : vector<16x256xf32>
    %14 = vector.extract_strided_slice %4 {offsets = [32, 0], sizes = [16, 64], strides = [1, 1]} : vector<48x64xf32> to vector<16x64xf32>
    %c2 = arith.constant 2 : index
    %c0_12 = arith.constant 0 : index
    %c0_13 = arith.constant 0 : index
    %15 = vector.load %arg4[%c2, %c0_12, %c0_13] : memref<3x64x256xf32, #tpu.memory_space<vmem>>, vector<1x64x256xf32>
    %16 = vector.shape_cast %15 : vector<1x64x256xf32> to vector<64x256xf32>
    %cst_14 = arith.constant dense<0.000000e+00> : vector<16x256xf32>
    %17 = tpu.matmul %14, %16, %cst_14 {dimension_numbers = #tpu.dot_dimension_numbers<[1], [0], [0], [1], [0, 0, 1, 1], [], []>} : vector<16x64xf32>, vector<64x256xf32>, vector<16x256xf32> -> vector<16x256xf32>
    %18 = arith.addf %13, %17 : vector<16x256xf32>
    %c0_15 = arith.constant 0 : index
    %c0_16 = arith.constant 0 : index
    %19 = vector.load %arg5[%c0_15, %c0_16] : memref<1x256xf32, #tpu.memory_space<vmem>>, vector<1x256xf32>
    %20 = vector.shape_cast %19 : vector<1x256xf32> to vector<256xf32>
    %21 = vector.shape_cast %20 : vector<256xf32> to vector<1x256xf32>
    %22 = vector.broadcast %21 : vector<1x256xf32> to vector<16x256xf32>
    %23 = arith.addf %18, %22 : vector<16x256xf32>
    %c0_17 = arith.constant 0 : index
    %c0_18 = arith.constant 0 : index
    %c0_19 = arith.constant 0 : index
    %24 = vector.load %arg6[%c0_17, %c0_18, %c0_19] : memref<1x16x256xf32, #tpu.memory_space<vmem>>, vector<1x16x256xf32>
    %25 = vector.shape_cast %24 : vector<1x16x256xf32> to vector<16x256xf32>
    %26 = vector.shape_cast %23 : vector<16x256xf32> to vector<1x16x256xf32>
    tpu.vector_store %arg6[%c0_17, %c0_18, %c0_19], %26 {strides = array<i32>} : memref<1x16x256xf32, #tpu.memory_space<vmem>>, vector<1x16x256xf32>,
    return
  }
  func.func @transform_0(%arg0: i32, %arg1: i32) -> (i32, i32, i32) {
    %c0_i32 = arith.constant 0 : i32
    %c0_i32_0 = arith.constant 0 : i32
    %c0_i32_1 = arith.constant 0 : i32
    return %arg0, %c0_i32, %c0_i32_0 : i32, i32, i32
  }
  func.func @transform_1(%arg0: i32, %arg1: i32) -> (i32, i32, i32) {
    %c0_i32 = arith.constant 0 : i32
    %c0_i32_0 = arith.constant 0 : i32
    %c0_i32_1 = arith.constant 0 : i32
    return %arg1, %c0_i32, %c0_i32_0 : i32, i32, i32
  }
  func.func @transform_2(%arg0: i32, %arg1: i32) -> (i32, i32, i32) {
    %c0_i32 = arith.constant 0 : i32
    %c0_i32_0 = arith.constant 0 : i32
    %c0_i32_1 = arith.constant 0 : i32
    %c0_i32_2 = arith.constant 0 : i32
    return %c0_i32, %c0_i32_0, %c0_i32_1 : i32, i32, i32
  }
  func.func @transform_3(%arg0: i32, %arg1: i32) -> (i32, i32) {
    %c0_i32 = arith.constant 0 : i32
    %c0_i32_0 = arith.constant 0 : i32
    %c0_i32_1 = arith.constant 0 : i32
    return %c0_i32, %c0_i32_0 : i32, i32
  }
  func.func @transform_4(%arg0: i32, %arg1: i32) -> (i32, i32, i32) {
    %c0_i32 = arith.constant 0 : i32
    %c0_i32_0 = arith.constant 0 : i32
    return %arg0, %arg1, %c0_i32 : i32, i32, i32
  }
}

</mosaic_0001>

<bundles_post_ra>
// kernel: upsample_block_forward.1
= control target key start
LH: loop header
LB: loop body
LE: loop exit
PB: predicated region body
PF: predicated region fallthrough
CT: control target
= control target key end

     0   :  { %s1039_s15 = smov 0   ;;  %s1041_s16 = smov 0   ;;  %s1263_s0 = inlined_call_operand.vmem [shape: f32[2,16,64], index: 0, kind: input, shape index: {}]   ;;  %s1264_s1 = inlined_call_operand.vmem [shape: f32[2,48,16], index: 1, kind: input, shape index: {}]   ;;  %s1265_s2 = inlined_call_operand.vmem [shape: f32[3,64,256], index: 2, kind: input, shape index: {}]   ;;  %s1266_s3 = inlined_call_operand.vmem [shape: f32[1,256], index: 3, kind: input, shape index: {}]   ;;  %s1267_s4 = inlined_call_operand.vmem [shape: f32[2,32,256], index: 4, kind: output, shape index: {}]  }
   0x1   :  { %s1043_s17 = smov 0   ;;  %s1045_s18 = smov 0  }
   0x2   :  { %s1047_s19 = smov 0  }
   0x3 LB: > { %s23_s20 = sadd.s32 1, %s1003_s17  ;;  %s26_s21 = sadd.s32 1, %s1007_s18  ;;  %s1011_s19 = sphi %s1047_s19, %s14_s19   ;;  %s1007_s18 = sphi %s1045_s18, %s1271_s18   ;;  %s1003_s17 = sphi %s1043_s17, %s1270_s17   ;;  %s999_s16 = sphi %s1041_s16, %s1269_s16   ;;  %s995_s15 = sphi %s1039_s15, %s1268_s15  }
   0x4   : > { %p24_p0 = scmp.ge.s32.totalorder %s23_s20, 2  ;;  %p795_p1 = scmp.ge.s32.totalorder %s1011_s19, 1 }
   0x5   : > { %p186_p2 = scmp.lt.s32.totalorder %s1011_s19, 5 }
   0x6   : > { %s1273_s20 = smov (%p24_p0, %s23_s20), 0  ;;  %s1275_s21 = smov (!%p24_p0, %s26_s21), %s1007_s18 }
   0x7   : > { %p187_p3 = pnand %p795_p1, %p186_p2  ;;  %p28_p4 = scmp.ge.s32.totalorder %s1275_s21, 2 }
   0x8   : > { %p222_p5 = scmp.lt.s32.totalorder (!%p187_p3), %s999_s16, 1  ;;  %v366_v0 = vld [vmem:[%s1265_s2 + $0x8] sm:$0xff] (!%p187_p3)  ;;  %v368_v1 = vld [vmem:[%s1265_s2 + $0x18] sm:$0xff] (!%p187_p3)  ;;  %v365_v2 = vld [vmem:[%s1265_s2] sm:$0xff] (!%p187_p3)  ;;  %p227_p6 = scmp.lt.s32.totalorder (!%p187_p3), %s995_s15, 1  ;;  %vm251_vm0 = vcmask (!%p187_p3), 130048  }
   0x9   : > { %s1277_s21 = smov (%p28_p4, %s1275_s21), 0  ;;  %190 = sbr.rel (%p187_p3) target bundleno = 477 (0x1dd), region = 36 }
   0xa   : > { %v891_v3 = vpack.c.bf16 (!%p187_p3), %v368_v1, %v366_v0  ;;  %v367_v4 = vld [vmem:[%s1265_s2 + $0x10] sm:$0xff] (!%p187_p3)  ;;  %v370_v5 = vld [vmem:[%s1265_s2 + $0x28] sm:$0xff] (!%p187_p3)  ;;  %v372_v6 = vld [vmem:[%s1265_s2 + $0x38] sm:$0xff] (!%p187_p3)  ;;  %v1013_v54 = vmov (!%p187_p3), 0.0   ;;  %vm398_vm1 = vcmask (!%p187_p3), 523264   ;;  %s799_s6 = sshll.u32 (!%p187_p3), %s995_s15, 1 }
   0xb   : > { %v893_v7 = vpack.c.bf16 (!%p187_p3), %v367_v4, %v365_v2  ;;  %v895_v8 = vpack.c.bf16 (!%p187_p3), %v372_v6, %v370_v5  ;;  %v369_v9 = vld [vmem:[%s1265_s2 + $0x20] sm:$0xff] (!%p187_p3)  ;;  %v371_v10 = vld [vmem:[%s1265_s2 + $0x30] sm:$0xff] (!%p187_p3)  ;;  %v810_v11 = vld [vmem:[%s1265_s2 + $0x88] sm:$0xff] (!%p187_p3)  ;;  %552 = vmatprep.mubr.f32.mxu1 (!%p187_p3), %v1013_v54  ;;  %p235_p7 = scmp.lt.s32.totalorder (!%p187_p3), %s799_s6, 3 }
   0xc   : > { %892 = vmatprep.subr.bf16.mxu1 (!%p187_p3), %v891_v3  ;;  %v897_v12 = vpack.c.bf16 (!%p187_p3), %v371_v10, %v369_v9  ;;  %v812_v13 = vld [vmem:[%s1265_s2 + $0x98] sm:$0xff] (!%p187_p3)  ;;  %v374_v14 = vld [vmem:[%s1265_s2 + $0x48] sm:$0xff] (!%p187_p3)  ;;  %v373_v17 = vld [vmem:[%s1265_s2 + $0x40] sm:$0xff] (!%p187_p3) }
   0xd   : > { %894 = vmatpush1.bf16.msra.mxu1 (!%p187_p3), %v893_v7  ;;  %v376_v15 = vld [vmem:[%s1265_s2 + $0x58] sm:$0xff] (!%p187_p3)  ;;  %v375_v18 = vld [vmem:[%s1265_s2 + $0x50] sm:$0xff] (!%p187_p3)  ;;  %v875_v22 = vpack.c.bf16 (!%p187_p3), %v812_v13, %v810_v11  ;;  %v378_v23 = vld [vmem:[%s1265_s2 + $0x68] sm:$0xff] (!%p187_p3) }
   0xe   : > { %896 = vmatprep.subr.bf16.mxu1 (!%p187_p3), %v895_v8  ;;  %v899_v16 = vpack.c.bf16 (!%p187_p3), %v376_v15, %v374_v14  ;;  %v380_v24 = vld [vmem:[%s1265_s2 + $0x78] sm:$0xff] (!%p187_p3)  ;;  %v809_v25 = vld [vmem:[%s1265_s2 + $0x80] sm:$0xff] (!%p187_p3)  ;;  %v811_v26 = vld [vmem:[%s1265_s2 + $0x90] sm:$0xff] (!%p187_p3)  ;;  %v901_v27 = vpack.c.bf16 (!%p187_p3), %v375_v18, %v373_v17 }
   0xf   : > { %v814_v28 = vld [vmem:[%s1265_s2 + $0xa8] sm:$0xff] (!%p187_p3)  ;;  %v816_v29 = vld [vmem:[%s1265_s2 + $0xb8] sm:$0xff] (!%p187_p3)  ;;  %v903_v30 = vpack.c.bf16 (!%p187_p3), %v380_v24, %v378_v23  ;;  %v377_v31 = vld [vmem:[%s1265_s2 + $0x60] sm:$0xff] (!%p187_p3)  ;;  %v877_v33 = vpack.c.bf16 (!%p187_p3), %v811_v26, %v809_v25  ;;  %v671_v24 = vlaneseq (!%p187_p3) }
  0x10   : > { %s1279_s16 = smov (!%p222_p5, %s999_s16), 1  ;;  %v379_v32 = vld [vmem:[%s1265_s2 + $0x70] sm:$0xff]  ;;  %v813_v34 = vld [vmem:[%s1265_s2 + $0xa0] sm:$0xff]  ;;  %v879_v39 = vpack.c.bf16 %v816_v29, %v814_v28  ;;  %v818_v41 = vld [vmem:[%s1265_s2 + $0xc8] sm:$0xff]  ;;  %s1281_s6 = smov (!%p235_p7, %s799_s6), 3 }
  0x11   : > { %s849_s14 = sshll.u32 %s1279_s16, 4  ;;  %898 = vmatpush1.bf16.msra.mxu1 %v897_v12  ;;  %v815_v35 = vld [vmem:[%s1265_s2 + $0xb0] sm:$0xff]  ;;  %v905_v40 = vpack.c.bf16 %v379_v32, %v377_v31  ;;  %v820_v42 = vld [vmem:[%s1265_s2 + $0xd8] sm:$0xff]  ;;  %v817_v48 = vld [vmem:[%s1265_s2 + $0xc0] sm:$0xff]  ;;  %s800_s7 = sshll.u32 %s1281_s6, 1 }
  0x12   : > { %s226_s30 = scalar_lea.vmem %s1263_s0, %s849_s14  ;;  %900 = vmatprep.subr.bf16.mxu1 %v899_v16  ;;  %v881_v44 = vpack.c.bf16 %v815_v35, %v813_v34  ;;  %v883_v46 = vpack.c.bf16 %v820_v42, %v818_v41  ;;  %v819_v49 = vld [vmem:[%s1265_s2 + $0xd0] sm:$0xff]  ;;  %v830_v51 = vld [vmem:[%s1265_s2 + $0x108] sm:$0xff]  ;;  %v832_v52 = vld [vmem:[%s1265_s2 + $0x118] sm:$0xff]  ;;  %s801_s8 = sshll.u32 %s1279_s16, 3 }
  0x13   : > { %v243_v19 = vld [vmem:[%s226_s30] sm:$0xff]  ;;  %v244_v20 = vld [vmem:[%s226_s30 + $0x8] sm:$0xff]  ;;  %s228_s9 = scalar_select %p227_p6, %s995_s15, 1  ;;  %v885_v50 = vpack.c.bf16 %v819_v49, %v817_v48  ;;  %v907_v53 = vpack.c.bf16 %v832_v52, %v830_v51  ;;  %v824_v56 = vld [vmem:[%s1265_s2 + $0xf8] sm:$0xff] }
  0x14   : > { %v871_v21 = vpack.c.bf16 %v244_v20, %v243_v19  ;;  %v822_v55 = vld [vmem:[%s1265_s2 + $0xe8] sm:$0xff]  ;;  %v821_v58 = vld [vmem:[%s1265_s2 + $0xe0] sm:$0xff]  ;;  %v823_v59 = vld [vmem:[%s1265_s2 + $0xf0] sm:$0xff]  ;;  %s239_s10 = sadd.s32 %s801_s8, %s800_s7 }
  0x15   : > { %s931_s27 = smul.u32 48, %s228_s9  ;;  %902 = vmatpush1.bf16.msra.mxu1 %v901_v27  ;;  %v887_v57 = vpack.c.bf16 %v824_v56, %v822_v55  ;;  %v889_v60 = vpack.c.bf16 %v823_v59, %v821_v58  ;;  %v829_v61 = vld [vmem:[%s1265_s2 + $0x100] sm:$0xff]  ;;  %v831_v62 = vld [vmem:[%s1265_s2 + $0x110] sm:$0xff]  ;;  %v834_v63 = vld [vmem:[%s1265_s2 + $0x128] sm:$0xff]  ;;  %v672_v27 = vshrl.u32 %v671_v24, 7  ;;  %s802_s12 = sshll.u32 %s239_s10, 3 }
  0x16   : > { %872 = vmatprep.subr.bf16.mxu0 %v871_v21  ;;  %904 = vmatprep.subr.bf16.mxu1 %v903_v30  ;;  %v836_v0 = vld [vmem:[%s1265_s2 + $0x138] sm:$0xff]  ;;  %v909_v1 = vpack.c.bf16 %v831_v62, %v829_v61  ;;  %v833_v4 = vld [vmem:[%s1265_s2 + $0x120] sm:$0xff]  ;;  %v835_v5 = vld [vmem:[%s1265_s2 + $0x130] sm:$0xff]  ;;  %s241_s14 = scalar_lea.vmem %s1267_s4, %s802_s12 }
  0x17   : > { %874 = vmatpush3.bf16.msra.mxu0 %v871_v21  ;;  %s231_s9 = scalar_lea.vmem %s1264_s1, %s931_s27  ;;  %v911_v3 = vpack.c.bf16 %v836_v0, %v834_v63  ;;  %v838_v7 = vld [vmem:[%s1265_s2 + $0x148] sm:$0xff]  ;;  %v840_v8 = vld [vmem:[%s1265_s2 + $0x158] sm:$0xff]  ;;  %v913_v9 = vpack.c.bf16 %v835_v5, %v833_v4  ;;  %v837_v12 = vld [vmem:[%s1265_s2 + $0x140] sm:$0xff]  ;;  %v673_v30 = vsub.s32 0, %v672_v27  ;;  %v677_v32 = vsub.s32 1, %v672_v27 }
  0x18   : > { %876 = vmatprep.subr.bf16.mxu0 %v875_v22  ;;  %v245_v36 = vld [vmem:[%s231_s9] sm:$0xff]  ;;  %v246_v37 = vld [vmem:[%s231_s9 + $0x8] sm:$0xff]  ;;  %v247_v38 = vld [vmem:[%s231_s9 + $0x10] sm:$0xff]  ;;  %v915_v11 = vpack.c.bf16 %v840_v8, %v838_v7 }
  0x19   : > { %862 = vmatprep.mubr.msk.f32.mxu0 %vm251_vm0, %v245_v36  ;;  %v248_v43 = vld [vmem:[%s231_s9 + $0x18] sm:$0xff]  ;;  %v249_v45 = vld [vmem:[%s231_s9 + $0x20] sm:$0xff]  ;;  %906 = vmatpush1.bf16.msra.mxu1 %v905_v40  ;;  %v250_v47 = vld [vmem:[%s231_s9 + $0x28] sm:$0xff] }
  0x1a   : > { %863 = vmatmul.mubr.msk.f32.vlgmr.msra.gmra.mrb[0].mxu0 %vm251_vm0, %v246_v37  ;;  %908 = vmatprep.subr.bf16.mxu1 %v907_v53  ;;  %v839_v13 = vld [vmem:[%s1265_s2 + $0x150] sm:$0xff]  ;;  %v842_v15 = vld [vmem:[%s1265_s2 + $0x168] sm:$0xff]  ;;  %v844_v16 = vld [vmem:[%s1265_s2 + $0x178] sm:$0xff] }
  0x1b   : > { %865 = vmatprep.mubr.msk.f32.mxu0 %vm251_vm0, %v247_v38  ;;  %878 = vmatpush1.bf16.msra.mxu0 %v877_v33  ;;  %v917_v17 = vpack.c.bf16 %v839_v13, %v837_v12  ;;  %v919_v18 = vpack.c.bf16 %v844_v16, %v842_v15  ;;  %v841_v20 = vld [vmem:[%s1265_s2 + $0x160] sm:$0xff]  ;;  %v843_v21 = vld [vmem:[%s1265_s2 + $0x170] sm:$0xff] }
  0x1c   : > { %880 = vmatprep.subr.bf16.mxu0 %v879_v39  ;;  %v921_v23 = vpack.c.bf16 %v843_v21, %v841_v20  ;;  %v669_v31 = vld [vmem:[%s1266_s3] sm:$0x3] }
  0x1d   : > { %v674_v33 = vrot.slane %v669_v31, %v673_v30  ;;  %v678_v35 = vrot.slane %v669_v31, %v677_v32 }
  0x1e   : > { %866 = vmatmul.mubr.msk.f32.gmra.mrb[2].mxu0 %vm251_vm0, %v248_v43 }
  0x1f   : > { %868 = vmatprep.mubr.msk.f32.mxu0 %vm251_vm0, %v249_v45  ;;  %882 = vmatpush1.bf16.msra.mxu0 %v881_v44 }
  0x20   : > { %884 = vmatprep.subr.bf16.mxu0 %v883_v46 }
  0x22   : > { %869 = vmatmul.mubr.msk.f32.gmra.mrb[4].mxu0 %vm251_vm0, %v250_v47 }
  0x23   : > { %886 = vmatpush1.bf16.msra.mxu0 %v885_v50  ;;  %469 = vmatprep.mubr.f32.mxu0 %v1013_v54 }
  0x24   : > { %888 = vmatprep.subr.bf16.mxu0 %v887_v57 }
  0x27   : > { %890 = vmatpush1.bf16.msra.mxu0 %v889_v60 }
  0xed   : > { %v864_v2 = vpop.f32.mrb[0].mxu0 }
  0xee   : > { %v336_v6 = vpop.f32.mrb[1].mxu0 }
  0xef   : > { %827 = vmatmul.mubr.msk.f32.vlgmr.msra.gmra.mrb[0].mxu1 %vm398_vm1, %v336_v6 }
  0xf0   : > { %910 = vmatpush1.bf16.msra.mxu1 %v909_v1  ;;  %558 = vmatprep.mubr.f32.mxu1 %v1013_v54 }
  0xf1   : > { %v867_v10 = vpop.f32.mrb[2].mxu0  ;;  %912 = vmatprep.subr.bf16.mxu1 %v911_v3 }
  0xf2   : > { %v346_v14 = vpop.f32.mrb[3].mxu0 }
  0xf3   : > { %828 = vmatmul.mubr.msk.f32.gmra.mrb[2].mxu1 %vm398_vm1, %v864_v2  ;;  %825 = vmatmul.mubr.msk.f32.vlgmr.msra.gmra.mrb[6].mxu0 %vm398_vm1, %v346_v14 }
  0xf4   : > { %914 = vmatpush1.bf16.msra.mxu1 %v913_v9  ;;  %475 = vmatprep.mubr.f32.mxu0 %v1013_v54 }
  0xf5   : > { %916 = vmatprep.subr.bf16.mxu1 %v915_v11  ;;  %v870_v19 = vpop.f32.mrb[4].mxu0  ;;  %652 = vmatprep.mubr.f32.mxu1 %v1013_v54 }
  0xf6   : > { %v356_v22 = vpop.f32.mrb[5].mxu0 }
  0xf7   : > { %826 = vmatmul.mubr.msk.f32.gmra.mrb[8].mxu0 %vm398_vm1, %v867_v10 }
  0xf8   : > { %918 = vmatpush1.bf16.msra.mxu1 %v917_v17 }
  0xf9   : > { %920 = vmatprep.subr.bf16.mxu1 %v919_v18 }
  0xfc   : > { %922 = vmatpush1.bf16.msra.mxu1 %v921_v23 }
  0xff   : > { %845 = vmatmul.mubr.msk.f32.vlgmr.msra.gmra.mrb[0].mxu1 %vm398_vm1, %v356_v22 }
 0x100   : > { %658 = vmatprep.mubr.f32.mxu1 %v1013_v54 }
 0x103   : > { %846 = vmatmul.mubr.msk.f32.gmra.mrb[2].mxu1 %vm398_vm1, %v870_v19 }
 0x1c6   : > { %v471_v25 = vpop.f32.mrb[6].mxu0 }
 0x1c7   : > { %v473_v26 = vpop.f32.mrb[7].mxu0 }
 0x1ca   : > { %v477_v28 = vpop.f32.mrb[8].mxu0 }
 0x1cb   : > { %v479_v29 = vpop.f32.mrb[9].mxu0 }
 0x1d2   : > { %v654_v34 = vpop.f32.mrb[0].mxu1 }
 0x1d3   : > { %v923_v36 = vadd.f32 %v654_v34, %v471_v25  ;;  %v656_v37 = vpop.f32.mrb[1].mxu1 }
 0x1d4   : > { %v924_v38 = vadd.f32 %v656_v37, %v473_v26 }
 0x1d5   : > { %v681_v39 = vadd.f32 %v923_v36, %v674_v33 }
 0x1d6   : > { %v682_v40 = vadd.f32 %v924_v38, %v678_v35  ;;  %v660_v41 = vpop.f32.mrb[2].mxu1 }
 0x1d7   : > { %685 = vst [vmem:[%s241_s14] sm:$0xff] %v681_v39  ;;  %v925_v42 = vadd.f32 %v660_v41, %v477_v28  ;;  %v662_v43 = vpop.f32.mrb[3].mxu1 }
 0x1d8   : > { %686 = vst [vmem:[%s241_s14 + $0x8] sm:$0xff] %v682_v40  ;;  %v926_v44 = vadd.f32 %v662_v43, %v479_v29 }
 0x1d9   : > { %v683_v45 = vadd.f32 %v925_v42, %v674_v33 }
 0x1da   : > { %v684_v46 = vadd.f32 %v926_v44, %v678_v35 }
 0x1db   : > { %687 = vst [vmem:[%s241_s14 + $0x10] sm:$0xff] %v683_v45 }
 0x1dc   : > { %688 = vst [vmem:[%s241_s14 + $0x18] sm:$0xff] %v684_v46 }
 0x1dd PF: > { %s14_s19 = sadd.s32 1, %s1011_s19   ;;  %s1268_s15 = smov %s1003_s17 }
 0x1de   : > { %p11_p8 = scmp.ge.s32.totalorder %s14_s19, 6   ;;  %s1269_s16 = smov %s1007_s18 }
 0x1df   : > { %s1270_s17 = smov %s1273_s20  ;;  %s1271_s18 = smov %s1277_s21 }
 0x1e0   :  { %13 = sbr.rel (!%p11_p8) target bundleno = 3 (0x3), region = 71 }

</bundles_post_ra>
